<compile_context>
chip_gen: v6e
topology: v6e:2x2x1
jax: 0.10.0
libtpu: 0.0.40
codegen_flags: <defaults>
</compile_context>

<pallas_src>
import functools

import jax
import jax.numpy as jnp
from jax import lax
from jax.experimental import pallas as pl
from jax.experimental.pallas import tpu as pltpu

HYPERGNN_DIM = 16   # hyperGNN_dim in the PyTorch module
MIDDLE_DIM = 2      # middle_dim in the PyTorch module

_LANE = 128         # TPU vreg lane width
_SUBLANE = 8        # TPU vreg sublane height


def _round_up(x, n):
    return ((x + n - 1) // n) * n


def _sigmoid(x):
    # Single native EUP op (tanh); numerically safe for large |x| (no
    # exp-overflow / inf*0 NaN path), and half the EUP pushes of
    # exp + reciprocal + Newton.
    return 0.5 * (jnp.tanh(0.5 * x) + 1.0)


def fc_kernel(x_ref, w1_ref, b1_ref, w2_ref, b2_ref, w3_ref, b3_ref, o_ref):
    """One (tm, dim_in) row tile -> one lane-dense (dim_out, tm) output tile.

    The whole layer stack is computed transposed (features on sublanes, rows
    on lanes) so the sigmoid EUP traffic, the intermediates and the output
    store are all lane-dense.
    """
    x = x_ref[...]                                   # (tm, dim_in), caller dtype
    w1 = w1_ref[...]
    if w1.dtype != x.dtype:                          # static at trace time
        w1 = w1.astype(x.dtype)

    # fc1 as an NT matmul: contract both operands' lane axes (q @ k.T
    # pattern) -> (16, tm) with f32 accumulation; no materialized x.T.
    h1 = lax.dot_general(
        w1, x,
        dimension_numbers=(((1,), (1,)), ((), ())),
        preferred_element_type=jnp.float32)          # (16, tm)
    h1 = _sigmoid(h1 + b1_ref[...].astype(jnp.float32))

    # fc2: (2, 16) @ (16, tm) -- tiny M/K but N = tm keeps the MXU lane-dense.
    h2 = jnp.dot(w2_ref[...].astype(jnp.float32), h1,
                 preferred_element_type=jnp.float32)  # (2, tm)
    h2 = _sigmoid(h2 + b2_ref[...].astype(jnp.float32))

    # fc3: a K = 2 contraction is pure MXU push/pop overhead -> two VPU
    # broadcast FMAs instead.
    w3 = w3_ref[...].astype(jnp.float32)              # (dim_out, 2)
    yt = (w3[:, 0:1] * h2[0:1, :]
          + w3[:, 1:2] * h2[1:2, :]
          + b3_ref[...].astype(jnp.float32))          # (dim_out, tm)

    # Lane-dense store: full-width vst, no in-kernel transpose.
    o_ref[...] = yt.astype(o_ref.dtype)


def _stream_budget_bytes():
    """VMEM budget for the pipelined streams + intermediates of one step."""
    cap = 64 << 20   # conservative default: v7x per-TC VMEM
    try:
        cap = int(getattr(pltpu.get_tpu_info(), "vmem_capacity_bytes", cap))
    except Exception:
        pass
    # Use at most ~1/3 of physical VMEM, capped so the same choice is safe
    # on a 64 MiB (v7x) part while still large on v5e/v6e (128 MiB).
    return int(min(max(cap // 3, 16 << 20), 32 << 20))


def _per_row_vmem_bytes(dim_in, dim_out, itemsize):
    """VMEM bytes per tile row, with 128-lane padding + f32 intermediates."""
    lane_in = _round_up(dim_in, _LANE)       # (tm, dim_in) block pads to 128 lanes
    sub_out = _round_up(dim_out, _SUBLANE)   # transposed output pads to 8 sublanes
    return (2 * lane_in * itemsize                           # x stream, double-buffered
            + 2 * sub_out * itemsize                         # y^T stream, double-buffered
            + (_round_up(HYPERGNN_DIM, _SUBLANE)
               + _round_up(MIDDLE_DIM, _SUBLANE)
               + sub_out) * 4)                               # f32 h1 / h2 / yt


def _choose_tm(m, dim_in, dim_out, itemsize, tm_cap):
    """Row-tile size: multiple of 128, as large as the VMEM budget allows
    (per-grid-step overhead ~0.35us -> bigger is better), but split into
    >= 2 near-equal tiles when there is enough work so a multi-TC part (v7x)
    can shard the "parallel" axis; on 1-TC chips the extra step is ~free."""
    per_row = _per_row_vmem_bytes(dim_in, dim_out, itemsize)
    budget = _stream_budget_bytes()
    fit = (budget // max(per_row, 1)) // _LANE * _LANE
    tm_max = max(_LANE, min(tm_cap, fit))
    n_steps = max(2 if m > _LANE else 1, pl.cdiv(m, tm_max))
    tm = _round_up(pl.cdiv(m, n_steps), _LANE)
    return int(max(_LANE, min(tm, tm_max)))


def _vmem_limit_bytes(tm, dim_in, dim_out, itemsize):
    """Explicit scoped-VMEM limit: per-step footprint + headroom, capped well
    under v7x's 64 MiB part (v5e/v6e have 128 MiB physical, so this is safe
    everywhere and lifts v5e's 16 MiB default)."""
    need = tm * _per_row_vmem_bytes(dim_in, dim_out, itemsize)
    need += 1 << 20                     # resident weights / biases (generous)
    need = int(need * 3 // 2) + (4 << 20)   # compiler temps / slack
    return int(max(32 << 20, min(need, 48 << 20)))


@functools.partial(jax.jit, static_argnames=("tm_cap",))
def fc_forward(x, params, *, tm_cap=8192):
    """x: (..., dim_in) -> (..., dim_out); same semantics as FC.forward."""
    w1, b1, w2, b2, w3, b3 = params
    dim_in = x.shape[-1]
    dim_out = w3.shape[0]

    lead_shape = x.shape[:-1]
    m = 1
    for s in lead_shape:
        m *= s
    x2 = x.reshape(m, dim_in)

    itemsize = x.dtype.itemsize
    tm = _choose_tm(m, dim_in, dim_out, itemsize, tm_cap)
    # No host-side padding pass: Pallas masks the partial last block.
    grid = (pl.cdiv(m, tm),)

    # Biases as (n, 1) columns so they broadcast over the lane (=row) axis of
    # the transposed intermediates.
    b1c = b1.reshape(-1, 1)
    b2c = b2.reshape(-1, 1)
    b3c = b3.reshape(-1, 1)

    out_t = pl.pallas_call(
        fc_kernel,
        # Lane-dense (transposed) output: features on sublanes, rows on lanes.
        out_shape=jax.ShapeDtypeStruct((dim_out, m), x.dtype),
        grid_spec=pl.GridSpec(
            grid=grid,
            in_specs=[
                pl.BlockSpec((tm, dim_in), lambda i: (i, 0)),
                # Constant-index blocks: fetched once, stay VMEM-resident.
                pl.BlockSpec((HYPERGNN_DIM, dim_in), lambda i: (0, 0)),
                pl.BlockSpec((HYPERGNN_DIM, 1), lambda i: (0, 0)),
                pl.BlockSpec((MIDDLE_DIM, HYPERGNN_DIM), lambda i: (0, 0)),
                pl.BlockSpec((MIDDLE_DIM, 1), lambda i: (0, 0)),
                pl.BlockSpec((dim_out, MIDDLE_DIM), lambda i: (0, 0)),
                pl.BlockSpec((dim_out, 1), lambda i: (0, 0)),
            ],
            out_specs=pl.BlockSpec((dim_out, tm), lambda i: (0, i)),
        ),
        compiler_params=pltpu.CompilerParams(
            dimension_semantics=("parallel",),
            vmem_limit_bytes=_vmem_limit_bytes(tm, dim_in, dim_out, itemsize),
        ),
    )(x2, w1, b1c, w2, b2c, w3, b3c)

    # Cheap layout fix-up outside the kernel (XLA transpose of a small slab).
    return out_t.T.reshape(*lead_shape, dim_out)


def init_fc_params(key, dim_in, dim_out, dtype=jnp.float32):
    """nn.Linear-style parameters: W has shape (out, in), b has shape (out,)."""
    ks = jax.random.split(key, 6)

    def linear(kw, kb, fan_in, fan_out):
        bound = 1.0 / float(fan_in) ** 0.5
        w = jax.random.uniform(kw, (fan_out, fan_in), dtype, -bound, bound)
        b = jax.random.uniform(kb, (fan_out,), dtype, -bound, bound)
        return w, b

    w1, b1 = linear(ks[0], ks[1], dim_in, HYPERGNN_DIM)
    w2, b2 = linear(ks[2], ks[3], HYPERGNN_DIM, MIDDLE_DIM)
    w3, b3 = linear(ks[4], ks[5], MIDDLE_DIM, dim_out)
    return (w1, b1, w2, b2, w3, b3)


def fc_reference(x, params):
    w1, b1, w2, b2, w3, b3 = params
    h1 = jax.nn.sigmoid(x @ w1.T + b1)
    h2 = jax.nn.sigmoid(h1 @ w2.T + b2)
    return h2 @ w3.T + b3


if __name__ == "__main__":
    batch, num_nodes, dim_in, dim_out = 2, 64, 32, 8

    key = jax.random.PRNGKey(0)
    kx, kp, kx2 = jax.random.split(key, 3)
    params = init_fc_params(kp, dim_in, dim_out)

    # Case 1: PDG2Seq-like (batch, num_nodes, dim_in); 128 rows -> one tile.
    x = jax.random.normal(kx, (batch, num_nodes, dim_in), jnp.float32)
    y = jax.block_until_ready(fc_forward(x, params))
    y_ref = fc_reference(x, params)
    assert y.shape == (batch, num_nodes, dim_out)
    assert jnp.allclose(y, y_ref, atol=5e-4, rtol=5e-4), (
        float(jnp.max(jnp.abs(y - y_ref))))

    # Case 2: row count (150) not a multiple of the tile -> exercises the
    # masked partial last block (no host-side padding path) and >1 grid step.
    xp = jax.random.normal(kx2, (3, 50, dim_in), jnp.float32)
    yp = jax.block_until_ready(fc_forward(xp, params))
    yp_ref = fc_reference(xp, params)
    assert yp.shape == (3, 50, dim_out)
    assert jnp.allclose(yp, yp_ref, atol=5e-4, rtol=5e-4), (
        float(jnp.max(jnp.abs(yp - yp_ref))))

    # Large-negative pre-activations: previously a NaN edge case of the
    # exp + approx-reciprocal sigmoid; the tanh form must match the reference.
    xl = 50.0 * jax.random.normal(jax.random.PRNGKey(7), (2, 64, dim_in),
                                  jnp.float32)
    yl = jax.block_until_ready(fc_forward(xl, params))
    yl_ref = fc_reference(xl, params)
    assert jnp.all(jnp.isfinite(yl))
    assert jnp.allclose(yl, yl_ref, atol=5e-4, rtol=5e-4), (
        float(jnp.max(jnp.abs(yl - yl_ref))))

    print("KERNEL_OK")
</pallas_src>

<mosaic_0001>
module attributes {stable_mosaic.version = 11 : i64} {
  func.func @fc_kernel(%arg0: i32, %arg1: memref<128x32xf32, #tpu.memory_space<vmem>>, %arg2: memref<16x32xf32, #tpu.memory_space<vmem>>, %arg3: memref<16x1xf32, #tpu.memory_space<vmem>>, %arg4: memref<2x16xf32, #tpu.memory_space<vmem>>, %arg5: memref<2x1xf32, #tpu.memory_space<vmem>>, %arg6: memref<8x2xf32, #tpu.memory_space<vmem>>, %arg7: memref<8x1xf32, #tpu.memory_space<vmem>>, %arg8: memref<8x128xf32, #tpu.memory_space<vmem>>) attributes {dimension_semantics = [#tpu.dimension_semantics<parallel>], iteration_bounds = array<i64: 1>, scalar_prefetch = 0 : i64, scratch_operands = 0 : i64, tpu.core_type = #tpu.core_type<tc>, window_params = [{transform_indices = @transform_0, window_bounds = array<i64: 128, 32>}, {pipeline_mode = #tpu.pipeline_mode<synchronous>, transform_indices = @transform_1, window_bounds = array<i64: 16, 32>}, {pipeline_mode = #tpu.pipeline_mode<synchronous>, transform_indices = @transform_2, window_bounds = array<i64: 16, 1>}, {pipeline_mode = #tpu.pipeline_mode<synchronous>, transform_indices = @transform_3, window_bounds = array<i64: 2, 16>}, {pipeline_mode = #tpu.pipeline_mode<synchronous>, transform_indices = @transform_4, window_bounds = array<i64: 2, 1>}, {pipeline_mode = #tpu.pipeline_mode<synchronous>, transform_indices = @transform_5, window_bounds = array<i64: 8, 2>}, {pipeline_mode = #tpu.pipeline_mode<synchronous>, transform_indices = @transform_6, window_bounds = array<i64: 8, 1>}, {transform_indices = @transform_7, window_bounds = array<i64: 8, 128>}]} {
    %c0 = arith.constant 0 : index
    %c0_0 = arith.constant 0 : index
    %0 = vector.load %arg1[%c0, %c0_0] : memref<128x32xf32, #tpu.memory_space<vmem>>, vector<128x32xf32>
    %c0_1 = arith.constant 0 : index
    %c0_2 = arith.constant 0 : index
    %1 = vector.load %arg2[%c0_1, %c0_2] : memref<16x32xf32, #tpu.memory_space<vmem>>, vector<16x32xf32>
    %cst = arith.constant dense<0.000000e+00> : vector<16x128xf32>
    %2 = tpu.matmul %1, %0, %cst {dimension_numbers = #tpu.dot_dimension_numbers<[1], [1], [0], [0], [0, 0, 1, 0], [], []>} : vector<16x32xf32>, vector<128x32xf32>, vector<16x128xf32> -> vector<16x128xf32>
    %c0_3 = arith.constant 0 : index
    %c0_4 = arith.constant 0 : index
    %3 = vector.load %arg3[%c0_3, %c0_4] : memref<16x1xf32, #tpu.memory_space<vmem>>, vector<16x1xf32>
    %4 = vector.broadcast %3 : vector<16x1xf32> to vector<16x128xf32>
    %5 = arith.addf %2, %4 : vector<16x128xf32>
    %cst_5 = arith.constant 5.000000e-01 : f32
    %6 = vector.broadcast %cst_5 : f32 to vector<16x128xf32>
    %7 = arith.mulf %6, %5 : vector<16x128xf32>
    %8 = math.tanh %7 : vector<16x128xf32>
    %cst_6 = arith.constant 1.000000e+00 : f32
    %9 = vector.broadcast %cst_6 : f32 to vector<16x128xf32>
    %10 = arith.addf %8, %9 : vector<16x128xf32>
    %cst_7 = arith.constant 5.000000e-01 : f32
    %11 = vector.broadcast %cst_7 : f32 to vector<16x128xf32>
    %12 = arith.mulf %11, %10 : vector<16x128xf32>
    %c0_8 = arith.constant 0 : index
    %c0_9 = arith.constant 0 : index
    %13 = vector.load %arg4[%c0_8, %c0_9] : memref<2x16xf32, #tpu.memory_space<vmem>>, vector<2x16xf32>
    %cst_10 = arith.constant dense<0.000000e+00> : vector<2x128xf32>
    %14 = tpu.matmul %13, %12, %cst_10 {dimension_numbers = #tpu.dot_dimension_numbers<[1], [0], [0], [1], [0, 0, 1, 1], [], []>} : vector<2x16xf32>, vector<16x128xf32>, vector<2x128xf32> -> vector<2x128xf32>
    %c0_11 = arith.constant 0 : index
    %c0_12 = arith.constant 0 : index
    %15 = vector.load %arg5[%c0_11, %c0_12] : memref<2x1xf32, #tpu.memory_space<vmem>>, vector<2x1xf32>
    %16 = vector.broadcast %15 : vector<2x1xf32> to vector<2x128xf32>
    %17 = arith.addf %14, %16 : vector<2x128xf32>
    %cst_13 = arith.constant 5.000000e-01 : f32
    %18 = vector.broadcast %cst_13 : f32 to vector<2x128xf32>
    %19 = arith.mulf %18, %17 : vector<2x128xf32>
    %20 = math.tanh %19 : vector<2x128xf32>
    %cst_14 = arith.constant 1.000000e+00 : f32
    %21 = vector.broadcast %cst_14 : f32 to vector<2x128xf32>
    %22 = arith.addf %20, %21 : vector<2x128xf32>
    %cst_15 = arith.constant 5.000000e-01 : f32
    %23 = vector.broadcast %cst_15 : f32 to vector<2x128xf32>
    %24 = arith.mulf %23, %22 : vector<2x128xf32>
    %c0_16 = arith.constant 0 : index
    %c0_17 = arith.constant 0 : index
    %25 = vector.load %arg6[%c0_16, %c0_17] : memref<8x2xf32, #tpu.memory_space<vmem>>, vector<8x2xf32>
    %26 = vector.extract_strided_slice %25 {offsets = [0, 0], sizes = [8, 1], strides = [1, 1]} : vector<8x2xf32> to vector<8x1xf32>
    %27 = vector.extract_strided_slice %24 {offsets = [0, 0], sizes = [1, 128], strides = [1, 1]} : vector<2x128xf32> to vector<1x128xf32>
    %28 = vector.broadcast %26 : vector<8x1xf32> to vector<8x128xf32>
    %29 = vector.broadcast %27 : vector<1x128xf32> to vector<8x128xf32>
    %30 = arith.mulf %28, %29 : vector<8x128xf32>
    %31 = vector.extract_strided_slice %25 {offsets = [0, 1], sizes = [8, 1], strides = [1, 1]} : vector<8x2xf32> to vector<8x1xf32>
    %32 = vector.extract_strided_slice %24 {offsets = [1, 0], sizes = [1, 128], strides = [1, 1]} : vector<2x128xf32> to vector<1x128xf32>
    %33 = vector.broadcast %31 : vector<8x1xf32> to vector<8x128xf32>
    %34 = vector.broadcast %32 : vector<1x128xf32> to vector<8x128xf32>
    %35 = arith.mulf %33, %34 : vector<8x128xf32>
    %36 = arith.addf %30, %35 : vector<8x128xf32>
    %c0_18 = arith.constant 0 : index
    %c0_19 = arith.constant 0 : index
    %37 = vector.load %arg7[%c0_18, %c0_19] : memref<8x1xf32, #tpu.memory_space<vmem>>, vector<8x1xf32>
    %38 = vector.broadcast %37 : vector<8x1xf32> to vector<8x128xf32>
    %39 = arith.addf %36, %38 : vector<8x128xf32>
    %c0_20 = arith.constant 0 : index
    %c0_21 = arith.constant 0 : index
    %40 = vector.load %arg8[%c0_20, %c0_21] : memref<8x128xf32, #tpu.memory_space<vmem>>, vector<8x128xf32>
    tpu.vector_store %arg8[%c0_20, %c0_21], %39 {strides = array<i32>} : memref<8x128xf32, #tpu.memory_space<vmem>>, vector<8x128xf32>,
    return
  }
  func.func @transform_0(%arg0: i32) -> (i32, i32) {
    %c0_i32 = arith.constant 0 : i32
    %c0_i32_0 = arith.constant 0 : i32
    return %arg0, %c0_i32 : i32, i32
  }
  func.func @transform_1(%arg0: i32) -> (i32, i32) {
    %c0_i32 = arith.constant 0 : i32
    %c0_i32_0 = arith.constant 0 : i32
    %c0_i32_1 = arith.constant 0 : i32
    return %c0_i32, %c0_i32_0 : i32, i32
  }
  func.func @transform_2(%arg0: i32) -> (i32, i32) {
    %c0_i32 = arith.constant 0 : i32
    %c0_i32_0 = arith.constant 0 : i32
    %c0_i32_1 = arith.constant 0 : i32
    return %c0_i32, %c0_i32_0 : i32, i32
  }
  func.func @transform_3(%arg0: i32) -> (i32, i32) {
    %c0_i32 = arith.constant 0 : i32
    %c0_i32_0 = arith.constant 0 : i32
    %c0_i32_1 = arith.constant 0 : i32
    return %c0_i32, %c0_i32_0 : i32, i32
  }
  func.func @transform_4(%arg0: i32) -> (i32, i32) {
    %c0_i32 = arith.constant 0 : i32
    %c0_i32_0 = arith.constant 0 : i32
    %c0_i32_1 = arith.constant 0 : i32
    return %c0_i32, %c0_i32_0 : i32, i32
  }
  func.func @transform_5(%arg0: i32) -> (i32, i32) {
    %c0_i32 = arith.constant 0 : i32
    %c0_i32_0 = arith.constant 0 : i32
    %c0_i32_1 = arith.constant 0 : i32
    return %c0_i32, %c0_i32_0 : i32, i32
  }
  func.func @transform_6(%arg0: i32) -> (i32, i32) {
    %c0_i32 = arith.constant 0 : i32
    %c0_i32_0 = arith.constant 0 : i32
    %c0_i32_1 = arith.constant 0 : i32
    return %c0_i32, %c0_i32_0 : i32, i32
  }
  func.func @transform_7(%arg0: i32) -> (i32, i32) {
    %c0_i32 = arith.constant 0 : i32
    %c0_i32_0 = arith.constant 0 : i32
    return %c0_i32, %arg0 : i32, i32
  }
}

</mosaic_0001>

<bundles_post_ra>
// kernel: fc_forward.1
= control target key start
LH: loop header
LB: loop body
LE: loop exit
PB: predicated region body
PF: predicated region fallthrough
CT: control target
= control target key end

     0   :  { %vm56_vm0 = vcmask 261120   ;;  %v408_v2 = vmov 0   ;;  %v409_v21 = vmov 0.0   ;;  %vm410_vm1 = vmmov 0   ;;  %s564_s0 = inlined_call_operand.vmem [shape: f32[128,32], index: 0, kind: input, shape index: {}]   ;;  %s565_s1 = inlined_call_operand.vmem [shape: f32[16,32], index: 1, kind: input, shape index: {}]   ;;  %s566_s2 = inlined_call_operand.vmem [shape: f32[16,1], index: 2, kind: input, shape index: {}]   ;;  %s567_s4 = inlined_call_operand.vmem [shape: f32[2,1], index: 4, kind: input, shape index: {}]   ;;  %s568_s5 = inlined_call_operand.vmem [shape: f32[8,2], index: 5, kind: input, shape index: {}]   ;;  %s569_s6 = inlined_call_operand.vmem [shape: f32[8,1], index: 6, kind: input, shape index: {}]   ;;  %s570_s3 = inlined_call_operand.vmem [shape: f32[2,16], index: 3, kind: input, shape index: {}]   ;;  %s571_s7 = inlined_call_operand.vmem [shape: f32[8,128], index: 7, kind: output, shape index: {}]  }
   0x1   :  { %v41_v0 = vld [vmem:[%s564_s0 + $0x78] sm:$0xff]  ;;  %v40_v1 = vld [vmem:[%s564_s0 + $0x70] sm:$0xff]  ;;  %398 = vset.pattern.permute.xlu0 %v408_v2  ;;  %399 = vset.pattern.permute.xlu1 %v408_v2  ;;  %v39_v3 = vld [vmem:[%s564_s0 + $0x68] sm:$0xff]  ;;  %v411_v24 = vmov 1   ;;  %vm201_vm2 = vcmask 130048   ;;  %v285_v46 = vlaneseq }
   0x2   :  { %352 = vmatprep.subr.msk.mxu0 %vm56_vm0, %v41_v0  ;;  %v42_v4 = vld [vmem:[%s565_s1] sm:$0xff]  ;;  %v45_v5 = vld [vmem:[%s566_s2 + $0x8] sm:$0xff]  ;;  %v37_v8 = vld [vmem:[%s564_s0 + $0x58] sm:$0xff]  ;;  %387 = vmatprep.subr.mxu1 %v409_v21 }
   0x3   :  { %353 = vmatpush3.xpose.msk.msra.mxu0 %vm56_vm0, %v41_v0  ;;  %384 = vmatprep.mubr.msk.f32.mxu0 %vm56_vm0, %v42_v4  ;;  %v38_v6 = vld [vmem:[%s564_s0 + $0x60] sm:$0xff]  ;;  %v36_v9 = vld [vmem:[%s564_s0 + $0x50] sm:$0xff]  ;;  %v35_v10 = vld [vmem:[%s564_s0 + $0x48] sm:$0xff]  ;;  %v286_v47 = vshrl.u32 %v285_v46, 7 }
   0x4   :  { %354 = vmatprep.subr.msk.mxu0 %vm56_vm0, %v40_v1  ;;  %53 = vperm.xlu0 %398, %v45_v5   ;;  %v44_v7 = vld [vmem:[%s566_s2] sm:$0xff]  ;;  %v33_v12 = vld [vmem:[%s564_s0 + $0x38] sm:$0xff]  ;;  %v32_v13 = vld [vmem:[%s564_s0 + $0x30] sm:$0xff] }
   0x5   :  { %v34_v11 = vld [vmem:[%s564_s0 + $0x40] sm:$0xff]  ;;  %v31_v14 = vld [vmem:[%s564_s0 + $0x28] sm:$0xff]  ;;  %v29_v16 = vld [vmem:[%s564_s0 + $0x18] sm:$0xff]  ;;  %391 = vmatprep.mubr.msk.f32.mxu1 %vm410_vm1, %v409_v21  ;;  %v287_v49 = vsub.s32 0, %v286_v47  ;;  %v296_v50 = vsub.s32 1, %v286_v47 }
   0x6   :  { %v30_v15 = vld [vmem:[%s564_s0 + $0x20] sm:$0xff]  ;;  %v28_v17 = vld [vmem:[%s564_s0 + $0x10] sm:$0xff]  ;;  %v27_v18 = vld [vmem:[%s564_s0 + $0x8] sm:$0xff] }
   0x7   :  { %355 = vmatpush3.xpose.msk.msra.mxu0 %vm56_vm0, %v40_v1  ;;  %v26_v19 = vld [vmem:[%s564_s0] sm:$0xff]  ;;  %v43_v20 = vld [vmem:[%s565_s1 + $0x8] sm:$0xff] }
   0x8   :  { %356 = vmatprep.subr.msk.mxu0 %vm56_vm0, %v39_v3  ;;  %48 = vperm.xlu0 %398, %v44_v7   ;;  %v195_v22 = vld [vmem:[%s567_s4] sm:$0x3] }
   0x9   :  { %v279_v23 = vld [vmem:[%s568_s5] sm:$0xff]  ;;  %198 = vperm.xlu1 %399, %v195_v22  }
   0xa   :  { %v300_v25 = vld [vmem:[%s569_s6] sm:$0xff] }
   0xb   :  { %357 = vmatpush3.xpose.msk.msra.mxu0 %vm56_vm0, %v39_v3  ;;  %v194_v40 = vld [vmem:[%s570_s3] sm:$0x3] }
   0xc   :  { %358 = vmatprep.subr.msk.mxu0 %vm56_vm0, %v38_v6  ;;  %400 = vset.pattern.permute.xlu0 %v411_v24 }
   0xd   :  { %291 = vperm.xlu0 %400, %v279_v23   ;;  %282 = vperm.xlu1 %399, %v279_v23  }
   0xf   :  { %359 = vmatpush3.xpose.msk.msra.mxu0 %vm56_vm0, %v38_v6 }
  0x10   :  { %360 = vmatprep.subr.msk.mxu0 %vm56_vm0, %v37_v8 }
  0x11   :  { %401 = vset.pattern.permute.xlu0 %v408_v2  ;;  %303 = vperm.xlu1 %399, %v300_v25  }
  0x13   :  { %361 = vmatpush3.xpose.msk.msra.mxu0 %vm56_vm0, %v37_v8 }
  0x14   :  { %362 = vmatprep.subr.msk.mxu0 %vm56_vm0, %v36_v9 }
  0x17   :  { %363 = vmatpush3.xpose.msk.msra.mxu0 %vm56_vm0, %v36_v9 }
  0x18   :  { %364 = vmatprep.subr.msk.mxu0 %vm56_vm0, %v35_v10 }
  0x1b   :  { %365 = vmatpush3.xpose.msk.msra.mxu0 %vm56_vm0, %v35_v10 }
  0x1c   :  { %366 = vmatprep.subr.msk.mxu0 %vm56_vm0, %v34_v11 }
  0x1f   :  { %367 = vmatpush3.xpose.msk.msra.mxu0 %vm56_vm0, %v34_v11 }
  0x20   :  { %368 = vmatprep.subr.msk.mxu0 %vm56_vm0, %v33_v12 }
  0x23   :  { %369 = vmatpush3.xpose.msk.msra.mxu0 %vm56_vm0, %v33_v12 }
  0x24   :  { %370 = vmatprep.subr.msk.mxu0 %vm56_vm0, %v32_v13 }
  0x27   :  { %371 = vmatpush3.xpose.msk.msra.mxu0 %vm56_vm0, %v32_v13 }
  0x28   :  { %372 = vmatprep.subr.msk.mxu0 %vm56_vm0, %v31_v14 }
  0x2b   :  { %373 = vmatpush3.xpose.msk.msra.mxu0 %vm56_vm0, %v31_v14 }
  0x2c   :  { %374 = vmatprep.subr.msk.mxu0 %vm56_vm0, %v30_v15 }
  0x2f   :  { %375 = vmatpush3.xpose.msk.msra.mxu0 %vm56_vm0, %v30_v15 }
  0x30   :  { %376 = vmatprep.subr.msk.mxu0 %vm56_vm0, %v29_v16 }
  0x33   :  { %377 = vmatpush3.xpose.msk.msra.mxu0 %vm56_vm0, %v29_v16 }
  0x34   :  { %378 = vmatprep.subr.msk.mxu0 %vm56_vm0, %v28_v17 }
  0x37   :  { %379 = vmatpush3.xpose.msk.msra.mxu0 %vm56_vm0, %v28_v17 }
  0x38   :  { %380 = vmatprep.subr.msk.mxu0 %vm56_vm0, %v27_v18 }
  0x3b   :  { %381 = vmatpush3.xpose.msk.msra.mxu0 %vm56_vm0, %v27_v18 }
  0x3c   :  { %382 = vmatprep.subr.msk.mxu0 %vm56_vm0, %v26_v19 }
  0x3f   :  { %383 = vmatpush3.xpose.msk.msra.mxu0 %vm56_vm0, %v26_v19 }
  0x42   :  { %385 = vmatmul.mubr.msk.f32.vlgmr.msra.gmra.mxu0 %vm56_vm0, %v43_v20 }
  0x7f   :  { %v54_v26 = vpop.permute.xlu0 %53 }
  0x83   :  { %v49_v29 = vpop.permute.xlu0 %48 }
  0x84   :  { %v199_v41 = vpop.permute.xlu1 %198 }
  0x88   :  { %v283_v53 = vpop.permute.xlu1 %282  ;;  %v292_v54 = vpop.permute.xlu0 %291 }
  0x8c   :  { %v304_v60 = vpop.permute.xlu1 %303 }
 0x102   :  { %v386_v27 = vpop.f32.mrf.mxu0 }
 0x103   :  { %v183_v28 = vadd.f32 %v386_v27, %v54_v26 }
 0x104   :  { %v177_v30 = vpop.f32.mrf.mxu0 }
 0x105   :  { %v187_v31 = vmul.f32 0.5, %v183_v28  ;;  %v178_v32 = vadd.f32 %v177_v30, %v49_v29 }
 0x107   :  { %402 = vtanh.f32 %v187_v31  ;;  %v186_v33 = vmul.f32 0.5, %v178_v32 }
 0x109   :  { %404 = vtanh.f32 %v186_v33 }
 0x114   :  { %v403_v34 = vpop.eup %402 }
 0x115   :  { %v191_v35 = vadd.f32 1.0, %v403_v34 }
 0x116   :  { %v405_v36 = vpop.eup %404 }
 0x117   :  { %v193_v37 = vmul.f32 0.5, %v191_v35  ;;  %v190_v38 = vadd.f32 1.0, %v405_v36 }
 0x119   :  { %388 = vmatpush3.msra.mxu1 %v193_v37  ;;  %v192_v39 = vmul.f32 0.5, %v190_v38 }
 0x11a   :  { %389 = vmatprep.subr.mxu1 %v409_v21 }
 0x11b   :  { %390 = vmatpush3.msra.mxu1 %v192_v39 }
 0x11c   :  { %392 = vmatmul.mubr.msk.f32.vlgmr.msra.gmra.mxu1 %vm201_vm2, %v194_v40 }
 0x1dc   :  { %v271_v42 = vpop.f32.mrf.mxu1 }
 0x1dd   :  { %v272_v43 = vadd.f32 %v271_v42, %v199_v41 }
 0x1de   :  { %v393_v44 = vpop.f32.mrf.mxu1 }
 0x1df   :  { %v275_v45 = vmul.f32 0.5, %v272_v43 }
 0x1e1   :  { %406 = vtanh.f32 %v275_v45 }
 0x1ee   :  { %v407_v48 = vpop.eup %406 }
 0x1ef   :  { %v277_v51 = vadd.f32 1.0, %v407_v48 }
 0x1f1   :  { %v278_v52 = vmul.f32 0.5, %v277_v51 }
 0x1f3   :  { %v288_v55 = vrot.slane %v278_v52, %v287_v49  ;;  %v297_v56 = vrot.slane %v278_v52, %v296_v50 }
 0x1f5   :  { %v289_v57 = vmul.f32 %v288_v55, %v283_v53  ;;  %v298_v58 = vmul.f32 %v297_v56, %v292_v54 }
 0x1f7   :  { %v299_v59 = vadd.f32 %v298_v58, %v289_v57 }
 0x1f9   :  { %v306_v61 = vadd.f32 %v304_v60, %v299_v59 }
 0x1fb   :  { %307 = vst [vmem:[%s571_s7] sm:$0xff] %v306_v61 }

</bundles_post_ra>
